<compile_context>
chip_gen: v5e
topology: v5e:2x2
jax: 0.10.0
libtpu: 0.0.40
codegen_flags: <defaults>
</compile_context>

<pallas_src>
import jax
import jax.numpy as jnp
from jax.experimental import pallas as pl
from jax.experimental.pallas import tpu as pltpu

NEG_SLOPE = 0.01  # PyTorch F.leaky_relu default negative_slope


def _leaky_relu(x):
    return jnp.where(x > 0, x, NEG_SLOPE * x)


def residual_block_kernel(x_ref, w1_ref, b1_ref, w2_ref, b2_ref, o_ref):
    # x_ref:  (tb, Df)    batch tile (pipelined across the grid), Df = fold * D_in
    # w1_ref: (Df, Hf)    grid-resident block-diagonal weights
    # b1_ref: (1, Hf)     f32 biases (tiled fold x)
    # w2_ref: (Hf, Df)
    # b2_ref: (1, Df)
    x = x_ref[...]

    # fc1 + leaky_relu: MXU matmul on native dtype, f32 accumulate, f32 elementwise.
    h = jnp.dot(x, w1_ref[...], preferred_element_type=jnp.float32)
    h = _leaky_relu(h + b1_ref[...])

    # fc2 + residual + leaky_relu.
    y = jnp.dot(h.astype(w2_ref.dtype), w2_ref[...], preferred_element_type=jnp.float32)
    y = y + b2_ref[...] + x.astype(jnp.float32)
    o_ref[...] = _leaky_relu(y).astype(o_ref.dtype)


def _choose_fold(B, D):
    """Fold several batch rows into one lane-dense row: x[B, D] -> x[B/f, f*D] so the
    feature (lane) dim becomes 128 wide when possible."""
    if D >= 128 or 128 % D != 0:
        return 1
    f = 128 // D
    while f > 1 and B % f != 0:
        f //= 2
    return max(f, 1)


def _pick_tb(Bf, Df, itemsize, weight_bytes, vmem_budget=24 * 1024 * 1024):
    """Fewest, largest batch tiles: per-grid-step overhead (~0.35 us) dominates the DMA of
    these small tiles, so prefer grid=1.  Split into exactly 2 balanced steps only when each
    half tile is >= 512 KiB (amortizes the step cost and feeds both v7x TensorCores)."""
    def fits(tb):
        act = 2 * 2 * tb * Df * itemsize          # x-in + o-out tiles, double-buffered
        return act + 2 * weight_bytes <= vmem_budget

    half = Bf // 2
    if Bf % 16 == 0 and half * Df * itemsize >= (512 << 10) and fits(half):
        return half
    if fits(Bf):
        return Bf
    # Very large batches: halve until the tile fits VMEM (tile stays a multiple of 8 and a
    # divisor of Bf as long as we only halve 16-aligned sizes).
    tb = Bf
    while not fits(tb) and tb % 16 == 0:
        tb //= 2
    return tb


def residual_block(x, w1, b1, w2, b2, *, io_dtype=None):
    """x: [B, D_in]; w1: [D_in, H]; b1: [H]; w2: [H, D_out]; b2: [D_out].
    io_dtype: optional dtype (e.g. jnp.bfloat16) for the activation/weight HBM traffic;
    biases, residual add and leaky_relus always run in f32."""
    B, D_in = x.shape
    Din2, H = w1.shape
    H2, D_out = w2.shape
    assert Din2 == D_in and H2 == H
    assert D_out == D_in, "residual add requires output_dim == input_dim"

    out_dtype = io_dtype if io_dtype is not None else x.dtype
    if io_dtype is not None:
        x = x.astype(io_dtype)
        w1 = w1.astype(io_dtype)
        w2 = w2.astype(io_dtype)

    # Lane-dense fold: x[B, D] -> x[B/f, f*D], block-diagonal weights, tiled biases.
    fold = _choose_fold(B, D_in)
    Bf, Df, Hf = B // fold, fold * D_in, fold * H
    if fold > 1:
        x_f = x.reshape(Bf, Df)
        w1_f = jnp.kron(jnp.eye(fold, dtype=w1.dtype), w1)   # [Df, Hf]
        w2_f = jnp.kron(jnp.eye(fold, dtype=w2.dtype), w2)   # [Hf, Df]
        b1_f = jnp.tile(b1.astype(jnp.float32), fold)
        b2_f = jnp.tile(b2.astype(jnp.float32), fold)
    else:
        x_f, w1_f, w2_f = x, w1, w2
        b1_f = b1.astype(jnp.float32)
        b2_f = b2.astype(jnp.float32)
    b1_2d = b1_f.reshape(1, Hf)
    b2_2d = b2_f.reshape(1, Df)

    weight_bytes = (w1_f.size * w1_f.dtype.itemsize + w2_f.size * w2_f.dtype.itemsize
                    + b1_2d.size * 4 + b2_2d.size * 4)
    in_itemsize = jnp.dtype(x_f.dtype).itemsize
    out_itemsize = jnp.dtype(out_dtype).itemsize

    tb = _pick_tb(Bf, Df, max(in_itemsize, out_itemsize), weight_bytes)
    assert Bf % tb == 0

    cost = pl.CostEstimate(
        flops=int(2 * Bf * (Df * Hf + Hf * Df)),
        transcendentals=0,
        bytes_accessed=int(Bf * Df * in_itemsize + Bf * Df * out_itemsize + weight_bytes),
    )

    out_f = pl.pallas_call(
        residual_block_kernel,
        out_shape=jax.ShapeDtypeStruct((Bf, Df), out_dtype),
        grid_spec=pltpu.PrefetchScalarGridSpec(
            num_scalar_prefetch=0,
            grid=(Bf // tb,),
            in_specs=[
                pl.BlockSpec((tb, Df), lambda i: (i, 0)),   # x: pipelined batch tile
                pl.BlockSpec((Df, Hf), lambda i: (0, 0)),   # grid-resident weights/biases
                pl.BlockSpec((1, Hf), lambda i: (0, 0)),
                pl.BlockSpec((Hf, Df), lambda i: (0, 0)),
                pl.BlockSpec((1, Df), lambda i: (0, 0)),
            ],
            out_specs=pl.BlockSpec((tb, Df), lambda i: (i, 0)),
        ),
        compiler_params=pltpu.CompilerParams(
            dimension_semantics=("parallel",),
            vmem_limit_bytes=32 * 1024 * 1024,
        ),
        cost_estimate=cost,
    )(x_f, w1_f, b1_2d, w2_f, b2_2d)

    return out_f.reshape(B, D_out)


def residual_block_ref(x, w1, b1, w2, b2):
    h = _leaky_relu(x @ w1 + b1)
    return _leaky_relu(h @ w2 + b2 + x)


if __name__ == "__main__":
    key = jax.random.PRNGKey(0)
    kx, k1, kb1, k2, kb2 = jax.random.split(key, 5)

    # Shapes consistent with the module: input_dim = output_dim = 32, hidden_dim = 64.
    D_in, H = 32, 64
    D_out = D_in

    # PyTorch stores Linear weight as [out, in]; we store pre-transposed [in, out].
    w1 = jax.random.normal(k1, (D_in, H), dtype=jnp.float32) * (1.0 / jnp.sqrt(D_in))
    b1 = jax.random.normal(kb1, (H,), dtype=jnp.float32) * 0.01
    w2 = jax.random.normal(k2, (H, D_out), dtype=jnp.float32) * (1.0 / jnp.sqrt(H))
    b2 = jax.random.normal(kb2, (D_out,), dtype=jnp.float32) * 0.01

    # 1) Small-shape correctness check (B=8 -> lane-dense fold to [2, 128], grid = 1).
    B_small = 8
    x_small = jax.random.normal(kx, (B_small, D_in), dtype=jnp.float32)
    out_small = jax.block_until_ready(residual_block(x_small, w1, b1, w2, b2))
    ref_small = residual_block_ref(x_small, w1, b1, w2, b2)
    assert out_small.shape == (B_small, D_out)
    assert jnp.allclose(out_small, ref_small, atol=1e-4, rtol=1e-4), "small-batch mismatch"

    # 2) Larger batch exercising the 2-step pipelined grid (B=8192 -> [2048, 128], tb=1024).
    B_big = 8192
    x_big = jax.random.normal(kx, (B_big, D_in), dtype=jnp.float32)
    out_big = jax.block_until_ready(residual_block(x_big, w1, b1, w2, b2))
    ref_big = residual_block_ref(x_big, w1, b1, w2, b2)
    assert out_big.shape == (B_big, D_out)
    assert jnp.allclose(out_big, ref_big, atol=1e-4, rtol=1e-4), "big-batch mismatch"

    # 3) bf16 I/O path (halves activation HBM bytes on v6e/v7x); looser tolerance expected.
    out_bf16 = jax.block_until_ready(
        residual_block(x_small, w1, b1, w2, b2, io_dtype=jnp.bfloat16))
    assert out_bf16.dtype == jnp.bfloat16
    assert jnp.allclose(out_bf16.astype(jnp.float32), ref_small, atol=1e-1, rtol=5e-2), \
        "bf16 path mismatch"

    print("KERNEL_OK")
</pallas_src>

<mosaic_0001>
module attributes {stable_mosaic.version = 11 : i64} {
  func.func @residual_block_kernel(%arg0: i32, %arg1: memref<2x128xf32, #tpu.memory_space<vmem>>, %arg2: memref<128x256xf32, #tpu.memory_space<vmem>>, %arg3: memref<1x256xf32, #tpu.memory_space<vmem>>, %arg4: memref<256x128xf32, #tpu.memory_space<vmem>>, %arg5: memref<1x128xf32, #tpu.memory_space<vmem>>, %arg6: memref<2x128xf32, #tpu.memory_space<vmem>>) attributes {dimension_semantics = [#tpu.dimension_semantics<parallel>], iteration_bounds = array<i64: 1>, scalar_prefetch = 0 : i64, scratch_operands = 0 : i64, tpu.core_type = #tpu.core_type<tc>, window_params = [{transform_indices = @transform_0, window_bounds = array<i64: 2, 128>}, {pipeline_mode = #tpu.pipeline_mode<synchronous>, transform_indices = @transform_1, window_bounds = array<i64: 128, 256>}, {pipeline_mode = #tpu.pipeline_mode<synchronous>, transform_indices = @transform_2, window_bounds = array<i64: 1, 256>}, {pipeline_mode = #tpu.pipeline_mode<synchronous>, transform_indices = @transform_3, window_bounds = array<i64: 256, 128>}, {pipeline_mode = #tpu.pipeline_mode<synchronous>, transform_indices = @transform_4, window_bounds = array<i64: 1, 128>}, {transform_indices = @transform_5, window_bounds = array<i64: 2, 128>}]} {
    %c0 = arith.constant 0 : index
    %c0_0 = arith.constant 0 : index
    %0 = vector.load %arg1[%c0, %c0_0] : memref<2x128xf32, #tpu.memory_space<vmem>>, vector<2x128xf32>
    %c0_1 = arith.constant 0 : index
    %c0_2 = arith.constant 0 : index
    %1 = vector.load %arg2[%c0_1, %c0_2] : memref<128x256xf32, #tpu.memory_space<vmem>>, vector<128x256xf32>
    %cst = arith.constant dense<0.000000e+00> : vector<2x256xf32>
    %2 = tpu.matmul %0, %1, %cst {dimension_numbers = #tpu.dot_dimension_numbers<[1], [0], [0], [1], [0, 0, 1, 1], [], []>} : vector<2x128xf32>, vector<128x256xf32>, vector<2x256xf32> -> vector<2x256xf32>
    %c0_3 = arith.constant 0 : index
    %c0_4 = arith.constant 0 : index
    %3 = vector.load %arg3[%c0_3, %c0_4] : memref<1x256xf32, #tpu.memory_space<vmem>>, vector<1x256xf32>
    %4 = vector.broadcast %3 : vector<1x256xf32> to vector<2x256xf32>
    %5 = arith.addf %2, %4 : vector<2x256xf32>
    %cst_5 = arith.constant 0.000000e+00 : f32
    %6 = vector.broadcast %cst_5 : f32 to vector<2x256xf32>
    %7 = arith.cmpf ogt, %5, %6 : vector<2x256xf32>
    %cst_6 = arith.constant 0.00999999977 : f32
    %8 = vector.broadcast %cst_6 : f32 to vector<2x256xf32>
    %9 = arith.mulf %8, %5 : vector<2x256xf32>
    %10 = arith.select %7, %5, %9 : vector<2x256xi1>, vector<2x256xf32>
    %c0_7 = arith.constant 0 : index
    %c0_8 = arith.constant 0 : index
    %11 = vector.load %arg4[%c0_7, %c0_8] : memref<256x128xf32, #tpu.memory_space<vmem>>, vector<256x128xf32>
    %cst_9 = arith.constant dense<0.000000e+00> : vector<2x128xf32>
    %12 = tpu.matmul %10, %11, %cst_9 {dimension_numbers = #tpu.dot_dimension_numbers<[1], [0], [0], [1], [0, 0, 1, 1], [], []>} : vector<2x256xf32>, vector<256x128xf32>, vector<2x128xf32> -> vector<2x128xf32>
    %c0_10 = arith.constant 0 : index
    %c0_11 = arith.constant 0 : index
    %13 = vector.load %arg5[%c0_10, %c0_11] : memref<1x128xf32, #tpu.memory_space<vmem>>, vector<1x128xf32>
    %14 = vector.broadcast %13 : vector<1x128xf32> to vector<2x128xf32>
    %15 = arith.addf %12, %14 : vector<2x128xf32>
    %16 = arith.addf %15, %0 : vector<2x128xf32>
    %cst_12 = arith.constant 0.000000e+00 : f32
    %17 = vector.broadcast %cst_12 : f32 to vector<2x128xf32>
    %18 = arith.cmpf ogt, %16, %17 : vector<2x128xf32>
    %cst_13 = arith.constant 0.00999999977 : f32
    %19 = vector.broadcast %cst_13 : f32 to vector<2x128xf32>
    %20 = arith.mulf %19, %16 : vector<2x128xf32>
    %21 = arith.select %18, %16, %20 : vector<2x128xi1>, vector<2x128xf32>
    %c0_14 = arith.constant 0 : index
    %c0_15 = arith.constant 0 : index
    %22 = vector.load %arg6[%c0_14, %c0_15] : memref<2x128xf32, #tpu.memory_space<vmem>>, vector<2x128xf32>
    tpu.vector_store %arg6[%c0_14, %c0_15], %21 {strides = array<i32>} : memref<2x128xf32, #tpu.memory_space<vmem>>, vector<2x128xf32>,
    return
  }
  func.func @transform_0(%arg0: i32) -> (i32, i32) {
    %c0_i32 = arith.constant 0 : i32
    %c0_i32_0 = arith.constant 0 : i32
    return %arg0, %c0_i32 : i32, i32
  }
  func.func @transform_1(%arg0: i32) -> (i32, i32) {
    %c0_i32 = arith.constant 0 : i32
    %c0_i32_0 = arith.constant 0 : i32
    %c0_i32_1 = arith.constant 0 : i32
    return %c0_i32, %c0_i32_0 : i32, i32
  }
  func.func @transform_2(%arg0: i32) -> (i32, i32) {
    %c0_i32 = arith.constant 0 : i32
    %c0_i32_0 = arith.constant 0 : i32
    %c0_i32_1 = arith.constant 0 : i32
    return %c0_i32, %c0_i32_0 : i32, i32
  }
  func.func @transform_3(%arg0: i32) -> (i32, i32) {
    %c0_i32 = arith.constant 0 : i32
    %c0_i32_0 = arith.constant 0 : i32
    %c0_i32_1 = arith.constant 0 : i32
    return %c0_i32, %c0_i32_0 : i32, i32
  }
  func.func @transform_4(%arg0: i32) -> (i32, i32) {
    %c0_i32 = arith.constant 0 : i32
    %c0_i32_0 = arith.constant 0 : i32
    %c0_i32_1 = arith.constant 0 : i32
    return %c0_i32, %c0_i32_0 : i32, i32
  }
  func.func @transform_5(%arg0: i32) -> (i32, i32) {
    %c0_i32 = arith.constant 0 : i32
    %c0_i32_0 = arith.constant 0 : i32
    return %arg0, %c0_i32 : i32, i32
  }
}

</mosaic_0001>

<bundles_post_ra>
// kernel: tpu_custom_call.1
= control target key start
LH: loop header
LB: loop body
LE: loop exit
PB: predicated region body
PF: predicated region fallthrough
CT: control target
= control target key end

     0   :  { %10 = vsyncpa [#allocation3], 0  ;;  %s460_s0 = inlined_call_operand.hbm [shape: f32[2,128], index: 0, kind: input, shape index: {}]   ;;  %s461_s1 = inlined_call_operand.hbm [shape: f32[128,256], index: 1, kind: input, shape index: {}]   ;;  %s462_s2 = inlined_call_operand.hbm [shape: f32[1,256], index: 2, kind: input, shape index: {}]   ;;  %s463_s3 = inlined_call_operand.hbm [shape: f32[256,128], index: 3, kind: input, shape index: {}]   ;;  %s464_s4 = inlined_call_operand.vmem [shape: f32[1,128], index: 4, kind: input, shape index: {}]   ;;  %s465_s5 = inlined_call_operand.hbm [shape: f32[2,128], index: 5, kind: output, shape index: {}]  }
   0x1   :  { %11 = vsyncpa [#allocation6], 0 }
   0x2   :  { %12 = vsyncpa [#allocation9], 0  ;;  %s29_s20 = sshll.u32 %s461_s1, 4  ;;  %s30_s20 = int_to_ptr.hbm [resolvable:$true] %s29_s20 }
   0x3   :  { %13 = vsyncpa [#allocation4], 0  ;;  %s403_s21 = smov [#allocation5]   ;;  %s19_s25 = sshll.u32 %s460_s0, 4  ;;  %s20_s25 = int_to_ptr.hbm [resolvable:$true] %s19_s25 }
   0x4   :  { %s31_s22 = sshll.u32 %s403_s21, 4  ;;  %s404_s26 = smov 256   ;;  %s32_s22 = int_to_ptr.vmem [resolvable:$true] %s31_s22 }
   0x5   :  { %s405_s27 = smov 16   ;;  %s406_s28 = smov [#allocation2]  }
   0x6   :  { %37 = dma.hbm_to_vmem [thread:$0]  %s30_s20, 4096, %s32_s22, [#allocation6], %s404_s26, %s404_s26, %s405_s27  }
   0x7   :  { %s21_s29 = sshll.u32 %s406_s28, 4  ;;  %s43_s7 = sshll.u32 %s462_s2, 4  ;;  %s22_s29 = int_to_ptr.vmem [resolvable:$true] %s21_s29  ;;  %s44_s7 = int_to_ptr.hbm [resolvable:$true] %s43_s7 }
   0x8   :  { %24 = dma.hbm_to_vmem [thread:$0]  %s20_s25, 32, %s22_s29, [#allocation3]  }
   0x9   :  { %s53_s9 = sshll.u32 %s463_s3, 4  ;;  %s407_s10 = smov [#allocation7]   ;;  %s54_s9 = int_to_ptr.hbm [resolvable:$true] %s53_s9 }
   0xa   :  { %s45_s11 = sshll.u32 %s407_s10, 4  ;;  %s408_s0 = smov [#allocation8]   ;;  %s46_s11 = int_to_ptr.vmem [resolvable:$true] %s45_s11 }
   0xb   :  { %48 = dma.hbm_to_vmem [thread:$0]  %s44_s7, 32, %s46_s11, [#allocation6]  }
   0xc   :  { %s55_s12 = sshll.u32 %s408_s0, 4  ;;  %s409_s13 = smov 128   ;;  %s56_s12 = int_to_ptr.vmem [resolvable:$true] %s55_s12 }
   0xd   :  { %s410_s14 = smov 8  }
   0xe   :  { %61 = dma.hbm_to_vmem [thread:$0]  %s54_s9, 4096, %s56_s12, [#allocation9], %s409_s13, %s409_s13, %s410_s14  }
   0xf   :  { %395 = dma.done.wait [#allocation3], 32  }
  0x10   :  { %396 = vsyncadd [#allocation3], 4294967264 }
  0x11   :  { %397 = dma.done.wait [#allocation6], 4128  }
  0x12   :  { %398 = vsyncadd [#allocation6], 4294963168 }
  0x13   :  { %399 = dma.done.wait [#allocation9], 4096  }
  0x14   :  { %400 = vsyncadd [#allocation9], 4294963200  ;;  %v111_v0 = vld [vmem:[#allocation5 + $0xf0] sm:$0xff]  ;;  %v112_v1 = vld [vmem:[#allocation5 + $0xf8] sm:$0xff]  ;;  %s411_s15 = smov [#allocation10]   ;;  %s253_s19 = sshll.u32 %s465_s5, 4  ;;  %s254_s19 = int_to_ptr.hbm [resolvable:$true] %s253_s19 }
  0x15   :  { %v109_v2 = vld [vmem:[#allocation5 + $0xe0] sm:$0xff]  ;;  %119 = vmatpush.msra.mxu0 %v111_v0  ;;  %139 = vmatpush.msra.mxu1 %v112_v1  ;;  %v110_v3 = vld [vmem:[#allocation5 + $0xe8] sm:$0xff]  ;;  %v107_v4 = vld [vmem:[#allocation5 + $0xd0] sm:$0xff]  ;;  %s251_s16 = sshll.u32 %s411_s15, 4  ;;  %s252_s16 = int_to_ptr.vmem [resolvable:$true] %s251_s16 }
  0x16   :  { %v108_v5 = vld [vmem:[#allocation5 + $0xd8] sm:$0xff]  ;;  %v105_v6 = vld [vmem:[#allocation5 + $0xc0] sm:$0xff]  ;;  %v106_v7 = vld [vmem:[#allocation5 + $0xc8] sm:$0xff] }
  0x17   :  { %120 = vmatpush.msra.mxu0 %v109_v2  ;;  %140 = vmatpush.msra.mxu1 %v110_v3  ;;  %v103_v8 = vld [vmem:[#allocation5 + $0xb0] sm:$0xff]  ;;  %v104_v9 = vld [vmem:[#allocation5 + $0xb8] sm:$0xff]  ;;  %v101_v10 = vld [vmem:[#allocation5 + $0xa0] sm:$0xff] }
  0x18   :  { %v102_v11 = vld [vmem:[#allocation5 + $0xa8] sm:$0xff]  ;;  %v99_v12 = vld [vmem:[#allocation5 + $0x90] sm:$0xff]  ;;  %v100_v13 = vld [vmem:[#allocation5 + $0x98] sm:$0xff] }
  0x19   :  { %121 = vmatpush.msra.mxu0 %v107_v4  ;;  %141 = vmatpush.msra.mxu1 %v108_v5  ;;  %v180_v14 = vld [vmem:[#allocation8 + $0x78] sm:$0xff]  ;;  %v179_v16 = vld [vmem:[#allocation8 + $0x70] sm:$0xff]  ;;  %v98_v18 = vld [vmem:[#allocation5 + $0x88] sm:$0xff] }
  0x1a   :  { %v196_v15 = vld [vmem:[#allocation8 + $0xf8] sm:$0xff]  ;;  %201 = vmatpush.msra.mxu2 %v180_v14  ;;  %v195_v19 = vld [vmem:[#allocation8 + $0xf0] sm:$0xff]  ;;  %v178_v20 = vld [vmem:[#allocation8 + $0x68] sm:$0xff] }
  0x1b   :  { %122 = vmatpush.msra.mxu0 %v105_v6  ;;  %142 = vmatpush.msra.mxu1 %v106_v7  ;;  %v97_v17 = vld [vmem:[#allocation5 + $0x80] sm:$0xff]  ;;  %v194_v21 = vld [vmem:[#allocation8 + $0xe8] sm:$0xff]  ;;  %v96_v23 = vld [vmem:[#allocation5 + $0x78] sm:$0xff] }
  0x1c   :  { %221 = vmatpush.msra.mxu3 %v196_v15  ;;  %v95_v22 = vld [vmem:[#allocation5 + $0x70] sm:$0xff]  ;;  %202 = vmatpush.msra.mxu2 %v179_v16  ;;  %v177_v24 = vld [vmem:[#allocation8 + $0x60] sm:$0xff]  ;;  %v176_v28 = vld [vmem:[#allocation8 + $0x58] sm:$0xff] }
  0x1d   :  { %123 = vmatpush.msra.mxu0 %v103_v8  ;;  %143 = vmatpush.msra.mxu1 %v104_v9  ;;  %v193_v25 = vld [vmem:[#allocation8 + $0xe0] sm:$0xff]  ;;  %v192_v29 = vld [vmem:[#allocation8 + $0xd8] sm:$0xff]  ;;  %v91_v30 = vld [vmem:[#allocation5 + $0x50] sm:$0xff] }
  0x1e   :  { %222 = vmatpush.msra.mxu3 %v195_v19  ;;  %v93_v26 = vld [vmem:[#allocation5 + $0x60] sm:$0xff]  ;;  %v94_v27 = vld [vmem:[#allocation5 + $0x68] sm:$0xff]  ;;  %203 = vmatpush.msra.mxu2 %v178_v20  ;;  %v92_v31 = vld [vmem:[#allocation5 + $0x58] sm:$0xff] }
  0x1f   :  { %124 = vmatpush.msra.mxu0 %v101_v10  ;;  %144 = vmatpush.msra.mxu1 %v102_v11  ;;  %v175_v32 = vld [vmem:[#allocation8 + $0x50] sm:$0xff]  ;;  %v89_v34 = vld [vmem:[#allocation5 + $0x40] sm:$0xff]  ;;  %v90_v35 = vld [vmem:[#allocation5 + $0x48] sm:$0xff] }
  0x20   :  { %223 = vmatpush.msra.mxu3 %v194_v21  ;;  %204 = vmatpush.msra.mxu2 %v177_v24  ;;  %v191_v33 = vld [vmem:[#allocation8 + $0xd0] sm:$0xff]  ;;  %v174_v36 = vld [vmem:[#allocation8 + $0x48] sm:$0xff]  ;;  %v173_v40 = vld [vmem:[#allocation8 + $0x40] sm:$0xff] }
  0x21   :  { %125 = vmatpush.msra.mxu0 %v99_v12  ;;  %145 = vmatpush.msra.mxu1 %v100_v13  ;;  %v190_v37 = vld [vmem:[#allocation8 + $0xc8] sm:$0xff]  ;;  %v88_v39 = vld [vmem:[#allocation5 + $0x38] sm:$0xff]  ;;  %v189_v41 = vld [vmem:[#allocation8 + $0xc0] sm:$0xff] }
  0x22   :  { %224 = vmatpush.msra.mxu3 %v193_v25  ;;  %205 = vmatpush.msra.mxu2 %v176_v28  ;;  %v87_v38 = vld [vmem:[#allocation5 + $0x30] sm:$0xff]  ;;  %v85_v42 = vld [vmem:[#allocation5 + $0x20] sm:$0xff]  ;;  %v86_v43 = vld [vmem:[#allocation5 + $0x28] sm:$0xff] }
  0x23   :  { %126 = vmatpush.msra.mxu0 %v97_v17  ;;  %146 = vmatpush.msra.mxu1 %v98_v18  ;;  %v172_v44 = vld [vmem:[#allocation8 + $0x38] sm:$0xff]  ;;  %v83_v46 = vld [vmem:[#allocation5 + $0x10] sm:$0xff]  ;;  %v82_v51 = vld [vmem:[#allocation5 + $0x8] sm:$0xff] }
  0x24   :  { %225 = vmatpush.msra.mxu3 %v192_v29  ;;  %206 = vmatpush.msra.mxu2 %v175_v32  ;;  %v188_v45 = vld [vmem:[#allocation8 + $0xb8] sm:$0xff]  ;;  %v171_v48 = vld [vmem:[#allocation8 + $0x30] sm:$0xff]  ;;  %v170_v53 = vld [vmem:[#allocation8 + $0x28] sm:$0xff] }
  0x25   :  { %127 = vmatpush.msra.mxu0 %v95_v22  ;;  %147 = vmatpush.msra.mxu1 %v96_v23  ;;  %v84_v47 = vld [vmem:[#allocation5 + $0x18] sm:$0xff]  ;;  %v81_v50 = vld [vmem:[#allocation5] sm:$0xff]  ;;  %v186_v54 = vld [vmem:[#allocation8 + $0xa8] sm:$0xff] }
  0x26   :  { %226 = vmatpush.msra.mxu3 %v191_v33  ;;  %207 = vmatpush.msra.mxu2 %v174_v36  ;;  %v187_v49 = vld [vmem:[#allocation8 + $0xb0] sm:$0xff]  ;;  %v80_v52 = vld [vmem:[#allocation2] sm:$0x3]  ;;  %v169_v55 = vld [vmem:[#allocation8 + $0x20] sm:$0xff] }
  0x27   :  { %128 = vmatpush.msra.mxu0 %v93_v26  ;;  %148 = vmatpush.msra.mxu1 %v94_v27  ;;  %v185_v56 = vld [vmem:[#allocation8 + $0xa0] sm:$0xff]  ;;  %v168_v57 = vld [vmem:[#allocation8 + $0x18] sm:$0xff]  ;;  %v167_v59 = vld [vmem:[#allocation8 + $0x10] sm:$0xff] }
  0x28   :  { %227 = vmatpush.msra.mxu3 %v190_v37  ;;  %208 = vmatpush.msra.mxu2 %v173_v40  ;;  %v184_v58 = vld [vmem:[#allocation8 + $0x98] sm:$0xff]  ;;  %v183_v60 = vld [vmem:[#allocation8 + $0x90] sm:$0xff]  ;;  %v166_v61 = vld [vmem:[#allocation8 + $0x8] sm:$0xff] }
  0x29   :  { %129 = vmatpush.msra.mxu0 %v91_v30  ;;  %149 = vmatpush.msra.mxu1 %v92_v31  ;;  %v182_v62 = vld [vmem:[#allocation8 + $0x88] sm:$0xff]  ;;  %v165_v63 = vld [vmem:[#allocation8] sm:$0xff]  ;;  %v113_v1 = vld [vmem:[#allocation7] sm:$0x3] }
  0x2a   :  { %228 = vmatpush.msra.mxu3 %v189_v41  ;;  %209 = vmatpush.msra.mxu2 %v172_v44  ;;  %v181_v0 = vld [vmem:[#allocation8 + $0x80] sm:$0xff]  ;;  %v115_v2 = vperm.slane %v113_v1, 0  ;;  %v116_v3 = vperm.slane %v113_v1, 1  ;;  %v274_v12 = vld [vmem:[%s464_s4] ss:$0 sm:$0xff] }
  0x2b   :  { %130 = vmatpush.msra.mxu0 %v89_v34  ;;  %150 = vmatpush.msra.mxu1 %v90_v35 }
  0x2c   :  { %229 = vmatpush.msra.mxu3 %v188_v45  ;;  %210 = vmatpush.msra.mxu2 %v171_v48 }
  0x2d   :  { %131 = vmatpush.msra.mxu0 %v87_v38  ;;  %151 = vmatpush.msra.mxu1 %v88_v39 }
  0x2e   :  { %230 = vmatpush.msra.mxu3 %v187_v49  ;;  %211 = vmatpush.msra.mxu2 %v170_v53 }
  0x2f   :  { %132 = vmatpush.msra.mxu0 %v85_v42  ;;  %152 = vmatpush.msra.mxu1 %v86_v43 }
  0x30   :  { %231 = vmatpush.msra.mxu3 %v186_v54  ;;  %212 = vmatpush.msra.mxu2 %v169_v55 }
  0x31   :  { %133 = vmatpush.msra.mxu0 %v83_v46  ;;  %153 = vmatpush.msra.mxu1 %v84_v47 }
  0x32   :  { %232 = vmatpush.msra.mxu3 %v185_v56  ;;  %213 = vmatpush.msra.mxu2 %v168_v57 }
  0x33   :  { %134 = vmatpush.msra.mxu0 %v81_v50  ;;  %154 = vmatpush.msra.mxu1 %v82_v51 }
  0x34   :  { %135 = vmatmul.f32.vlgmr.msra.gmra.mxu0 %v80_v52  ;;  %155 = vmatmul.f32.vlgmr.msra.gmra.mxu1 %v80_v52 }
  0x35   :  { %233 = vmatpush.msra.mxu3 %v184_v58  ;;  %214 = vmatpush.msra.mxu2 %v167_v59 }
  0x37   :  { %234 = vmatpush.msra.mxu3 %v183_v60  ;;  %215 = vmatpush.msra.mxu2 %v166_v61 }
  0x39   :  { %235 = vmatpush.msra.mxu3 %v182_v62  ;;  %216 = vmatpush.msra.mxu2 %v165_v63 }
  0x3b   :  { %236 = vmatpush.msra.mxu3 %v181_v0 }
  0xb1   :  { %v136_v4 = vpop.f32.mrf.mxu0  ;;  %v156_v5 = vpop.f32.mrf.mxu1 }
  0xb2   :  { %v137_v6 = vadd.f32 %v136_v4, %v115_v2  ;;  %v157_v7 = vadd.f32 %v156_v5, %v116_v3 }
  0xb4   :  { %vm159_vm0 = vcmp.gt.f32.partialorder %v137_v6, 0.0  ;;  %v161_v8 = vmul.f32 0.01, %v137_v6  ;;  %vm160_vm1 = vcmp.gt.f32.partialorder %v157_v7, 0.0  ;;  %v162_v9 = vmul.f32 0.01, %v157_v7 }
  0xb6   :  { %v163_v10 = vsel %vm159_vm0, %v137_v6, %v161_v8  ;;  %v164_v11 = vsel %vm160_vm1, %v157_v7, %v162_v9 }
  0xb7   :  { %217 = vmatmul.f32.vlgmr.msra.gmra.mxu2 %v163_v10  ;;  %237 = vmatmul.f32.vlgmr.msra.gmra.mxu3 %v164_v11 }
 0x13a   :  { %v218_v13 = vpop.f32.mrf.mxu2  ;;  %v238_v15 = vpop.f32.mrf.mxu3 }
 0x13b   :  { %v219_v14 = vadd.f32 %v274_v12, %v218_v13 }
 0x13d   :  { %v239_v16 = vadd.f32 %v238_v15, %v219_v14 }
 0x13f   :  { %v241_v17 = vadd.f32 %v239_v16, %v80_v52 }
 0x141   :  { %v243_v18 = vmul.f32 0.01, %v241_v17  ;;  %vm242_vm2 = vcmp.gt.f32.partialorder %v241_v17, 0.0 }
 0x143   :  { %v244_v19 = vsel %vm242_vm2, %v241_v17, %v243_v18 }
 0x144   :  { %245 = vst [vmem:[#allocation10] sm:$0x3] %v244_v19 }
 0x145   :  { %256 = dma.vmem_to_hbm [thread:$0]  %s252_s16, 32, %s254_s19, [#allocation4]  }
 0x146   :  { %401 = dma.done.wait [#allocation4], 32  }
 0x147   :  { %402 = vsyncadd [#allocation4], 4294967264 }
 0x148   :  { %261 = vsyncpa [#allocation3], 1 }
 0x149   :  { %262 = vsyncpa [#allocation6], 1 }
 0x14a   :  { %263 = vsyncpa [#allocation9], 1 }
 0x14b   :  { %264 = vsyncpa [#allocation4], 1 }

</bundles_post_ra>
